<compile_context>
chip_gen: v5e
topology: v5e:2x2
jax: 0.10.0
libtpu: 0.0.40
codegen_flags: <defaults>
</compile_context>

<pallas_src>
import functools

import jax
import jax.numpy as jnp
from jax.experimental import pallas as pl
from jax.experimental.pallas import tpu as pltpu

LANE = 128
NEG_MASK = -1e30  # folded into padded b7 lanes >= num_out


def _round_up(x, m):
    return ((x + m - 1) // m) * m


def _choose_batch_tile(B, batch_tile):
    """Pick the batch tile: as big as possible, but >=2 grid steps for large B."""
    B8 = _round_up(B, 8)
    bt = min(_round_up(batch_tile, 8), B8)
    # v7x has 2 TensorCores per chip; with a single grid step the 2nd TC idles.
    # Once the batch is big enough that half of it still fills the MXU M axis,
    # split into (at least) two parallel steps. No-op on v5e/v6e (1 TC) and
    # for small batches.
    if bt >= B8 and B8 >= 512:
        bt = _round_up((B8 + 1) // 2, 8)
    return bt


def bluenet_kernel(x_ref,
                   w1_ref, b1_ref, w2_ref, b2_ref, w3_ref, b3_ref,
                   w4_ref, b4_ref, w5_ref, b5_ref, w6_ref, b6_ref,
                   w7_ref, b7_ref,
                   o_ref):
    """Fused MLP forward: 7 bf16 MXU matmuls, 6 ReLUs and a softmax, all in VMEM."""
    x = x_ref[...]  # f32 (bt, 128)

    # Hoist bias loads once (JAX does not CSE broadcast_in_dim).
    b1 = b1_ref[...]
    b2 = b2_ref[...]
    b3 = b3_ref[...]
    b4 = b4_ref[...]
    b5 = b5_ref[...]
    b6 = b6_ref[...]
    b7 = b7_ref[...]

    def linear(h, w_ref, b):
        # bf16 x bf16 -> f32 accumulate: single-pass MXU, elementwise math in f32.
        return jnp.dot(h.astype(jnp.bfloat16), w_ref[...],
                       preferred_element_type=jnp.float32) + b

    # fc1 = relu(l3(relu(l2(relu(l1(x))))))
    h = jnp.maximum(linear(x, w1_ref, b1), 0.0)
    h = jnp.maximum(linear(h, w2_ref, b2), 0.0)
    h = jnp.maximum(linear(h, w3_ref, b3), 0.0)
    # out = softmax(l7(relu(l6(relu(l5(relu(l4(fc1))))))))
    h = jnp.maximum(linear(h, w4_ref, b4), 0.0)
    h = jnp.maximum(linear(h, w5_ref, b5), 0.0)
    h = jnp.maximum(linear(h, w6_ref, b6), 0.0)
    # Padded lanes of b7 carry -1e30 (and padded w7 columns are exactly 0), so
    # padded logits are -1e30 and drop out of the softmax with no extra mask op.
    logits = linear(h, w7_ref, b7)

    m = jnp.max(logits, axis=-1, keepdims=True)
    e = jnp.exp(logits - m)                       # exp(-1e30 - m) == 0 exactly
    denom = jnp.sum(e, axis=-1, keepdims=True)
    inv = 1.0 / denom                             # exact divide on a (bt,1) column
    o_ref[...] = (e * inv).astype(o_ref.dtype)


def bluenet_forward(x, padded_params, num_in, num_out, *, batch_tile=512):
    """Run the fused BlueNet_all6b forward pass.

    x: (B, num_in) float32 (unpadded).
    padded_params: dict of lane-padded bf16 weights (in_p, out_p) and f32
      biases (1, out_p) produced by pad_params().
    Returns (B, num_out) softmax probabilities (float32).
    """
    B = x.shape[0]
    d_in_p = padded_params["w1"].shape[0]
    d_out_p = padded_params["w7"].shape[1]

    bt = _choose_batch_tile(B, batch_tile)
    B_pad = _round_up(B, bt)

    # Pad batch rows and input lanes with zeros (padded rows are sliced off).
    x_p = jnp.zeros((B_pad, d_in_p), jnp.float32).at[:B, :num_in].set(x)

    in_specs = [pl.BlockSpec((bt, d_in_p), lambda i: (i, 0))]
    flat_params = []
    for li in range(1, 8):
        w = padded_params[f"w{li}"]
        b = padded_params[f"b{li}"]
        in_specs.append(pl.BlockSpec(w.shape, lambda i: (0, 0)))  # VMEM-resident
        in_specs.append(pl.BlockSpec(b.shape, lambda i: (0, 0)))
        flat_params += [w, b]

    out_spec = pl.BlockSpec((bt, d_out_p), lambda i: (i, 0))

    # Advisory cost estimate (logical dims) so XLA can overlap this call.
    dims = [num_in, 2 * num_in, 3 * num_in, 3 * num_in, 3 * num_in,
            num_in, 2 * num_out, num_out]
    flops = 2 * B * sum(dims[i] * dims[i + 1] for i in range(7))
    bytes_accessed = (int(x.size) * 4
                      + sum(int(p.size) * p.dtype.itemsize for p in flat_params)
                      + B * num_out * 4)
    cost = pl.CostEstimate(flops=int(flops),
                           transcendentals=int(B * num_out),
                           bytes_accessed=int(bytes_accessed))

    grid_spec = pltpu.PrefetchScalarGridSpec(
        num_scalar_prefetch=0,
        grid=(B_pad // bt,),
        in_specs=in_specs,
        out_specs=out_spec,
    )

    # Weights (~224 KiB bf16) + bt<=1024 f32 activations are only a few MiB:
    # comfortably within every generation's scoped-VMEM default, so no
    # vmem_limit_bytes override (leave headroom for the compiler's staging).
    fn = pl.pallas_call(
        bluenet_kernel,
        out_shape=jax.ShapeDtypeStruct((B_pad, d_out_p), jnp.float32),
        grid_spec=grid_spec,
        compiler_params=pltpu.CompilerParams(
            dimension_semantics=("parallel",)),
        cost_estimate=cost,
    )
    out_p = fn(x_p, *flat_params)
    return out_p[:B, :num_out]


def init_params(key, num_in, num_out):
    """Deterministic synthetic init, shapes matching BlueNet_all6b (unpadded, f32)."""
    dims = [num_in, num_in * 2, num_in * 3, num_in * 3, num_in * 3,
            num_in, num_out * 2, num_out]
    params = {}
    keys = jax.random.split(key, 2 * (len(dims) - 1))
    for li in range(len(dims) - 1):
        fan_in, fan_out = dims[li], dims[li + 1]
        kw, kb = keys[2 * li], keys[2 * li + 1]
        scale = 1.0 / jnp.sqrt(jnp.float32(fan_in))
        # Stored as (in, out): y = x @ W + b  ==  PyTorch x @ W.T + b.
        params[f"w{li + 1}"] = jax.random.uniform(
            kw, (fan_in, fan_out), jnp.float32, -scale, scale)
        params[f"b{li + 1}"] = jax.random.uniform(
            kb, (1, fan_out), jnp.float32, -scale, scale)
    return params


def pad_params(params):
    """Zero-pad to 128-lane multiples, weights -> bf16, softmax mask folded into b7.

    Call ONCE at init and reuse across forward calls.
    """
    padded = {}
    for li in range(1, 8):
        w = params[f"w{li}"]
        b = params[f"b{li}"]
        fi, fo = w.shape
        fi_p, fo_p = _round_up(fi, LANE), _round_up(fo, LANE)
        wp = jnp.zeros((fi_p, fo_p), jnp.float32).at[:fi, :fo].set(w)
        padded[f"w{li}"] = wp.astype(jnp.bfloat16)     # single-pass MXU, half DMA
        if li == 7:
            # Padded logit lanes get -1e30 so they vanish from the softmax;
            # the padded w7 columns are exactly zero so this is exact.
            bp = jnp.full((1, fo_p), NEG_MASK, jnp.float32).at[:, :fo].set(b)
        else:
            bp = jnp.zeros((1, fo_p), jnp.float32).at[:, :fo].set(b)
        padded[f"b{li}"] = bp
    return padded


def bluenet_reference_f32(x, params):
    """Pure-JAX f32 reference of the original (PyTorch) forward pass."""
    h = x
    for li in range(1, 7):
        h = jnp.maximum(h @ params[f"w{li}"] + params[f"b{li}"], 0.0)
    logits = h @ params["w7"] + params["b7"]
    return jax.nn.softmax(logits, axis=-1)


def bluenet_reference_matched(x, params):
    """Pure-JAX reference with the SAME numerics as the kernel (bf16 in, f32 acc)."""
    h = x
    for li in range(1, 7):
        w = params[f"w{li}"].astype(jnp.bfloat16)
        h = jnp.maximum(
            jnp.dot(h.astype(jnp.bfloat16), w,
                    preferred_element_type=jnp.float32) + params[f"b{li}"], 0.0)
    w7 = params["w7"].astype(jnp.bfloat16)
    logits = jnp.dot(h.astype(jnp.bfloat16), w7,
                     preferred_element_type=jnp.float32) + params["b7"]
    return jax.nn.softmax(logits, axis=-1)


if __name__ == "__main__":
    num_in, num_out = 32, 8
    batch = 16

    key = jax.random.PRNGKey(0)
    kx, kp = jax.random.split(key)
    x = jax.random.normal(kx, (batch, num_in), dtype=jnp.float32)
    params = init_params(kp, num_in, num_out)
    padded = pad_params(params)          # one-time padding/bf16 cast, reused per call

    out = bluenet_forward(x, padded, num_in, num_out)
    out = jax.block_until_ready(out)
    assert out.shape == (batch, num_out)

    # Exact-numerics check (same bf16-input / f32-accumulate math as the kernel).
    ref_matched = bluenet_reference_matched(x, params)
    assert jnp.allclose(out, ref_matched, atol=1e-4, rtol=1e-4), \
        "mismatch vs matched-precision reference"

    # Fidelity check vs the pure-f32 PyTorch-equivalent forward (bf16 matmul
    # rounding accumulates over 7 layers, so the tolerance is looser here).
    ref_f32 = bluenet_reference_f32(x, params)
    assert jnp.allclose(out, ref_f32, atol=2e-2), "mismatch vs f32 reference"

    # Rows of a softmax sum to ~1 (exact divide in the epilogue).
    assert jnp.allclose(jnp.sum(out, axis=-1), 1.0, atol=1e-4)

    print("KERNEL_OK")
</pallas_src>

<mosaic_0001>
module attributes {stable_mosaic.version = 11 : i64} {
  func.func @bluenet_kernel(%arg0: i32, %arg1: memref<16x128xf32, #tpu.memory_space<vmem>>, %arg2: memref<128x128xbf16, #tpu.memory_space<vmem>>, %arg3: memref<1x128xf32, #tpu.memory_space<vmem>>, %arg4: memref<128x128xbf16, #tpu.memory_space<vmem>>, %arg5: memref<1x128xf32, #tpu.memory_space<vmem>>, %arg6: memref<128x128xbf16, #tpu.memory_space<vmem>>, %arg7: memref<1x128xf32, #tpu.memory_space<vmem>>, %arg8: memref<128x128xbf16, #tpu.memory_space<vmem>>, %arg9: memref<1x128xf32, #tpu.memory_space<vmem>>, %arg10: memref<128x128xbf16, #tpu.memory_space<vmem>>, %arg11: memref<1x128xf32, #tpu.memory_space<vmem>>, %arg12: memref<128x128xbf16, #tpu.memory_space<vmem>>, %arg13: memref<1x128xf32, #tpu.memory_space<vmem>>, %arg14: memref<128x128xbf16, #tpu.memory_space<vmem>>, %arg15: memref<1x128xf32, #tpu.memory_space<vmem>>, %arg16: memref<16x128xf32, #tpu.memory_space<vmem>>) attributes {dimension_semantics = [#tpu.dimension_semantics<parallel>], iteration_bounds = array<i64: 1>, scalar_prefetch = 0 : i64, scratch_operands = 0 : i64, tpu.core_type = #tpu.core_type<tc>, window_params = [{transform_indices = @transform_0, window_bounds = array<i64: 16, 128>}, {pipeline_mode = #tpu.pipeline_mode<synchronous>, transform_indices = @transform_1, window_bounds = array<i64: 128, 128>}, {pipeline_mode = #tpu.pipeline_mode<synchronous>, transform_indices = @transform_2, window_bounds = array<i64: 1, 128>}, {pipeline_mode = #tpu.pipeline_mode<synchronous>, transform_indices = @transform_3, window_bounds = array<i64: 128, 128>}, {pipeline_mode = #tpu.pipeline_mode<synchronous>, transform_indices = @transform_4, window_bounds = array<i64: 1, 128>}, {pipeline_mode = #tpu.pipeline_mode<synchronous>, transform_indices = @transform_5, window_bounds = array<i64: 128, 128>}, {pipeline_mode = #tpu.pipeline_mode<synchronous>, transform_indices = @transform_6, window_bounds = array<i64: 1, 128>}, {pipeline_mode = #tpu.pipeline_mode<synchronous>, transform_indices = @transform_7, window_bounds = array<i64: 128, 128>}, {pipeline_mode = #tpu.pipeline_mode<synchronous>, transform_indices = @transform_8, window_bounds = array<i64: 1, 128>}, {pipeline_mode = #tpu.pipeline_mode<synchronous>, transform_indices = @transform_9, window_bounds = array<i64: 128, 128>}, {pipeline_mode = #tpu.pipeline_mode<synchronous>, transform_indices = @transform_10, window_bounds = array<i64: 1, 128>}, {pipeline_mode = #tpu.pipeline_mode<synchronous>, transform_indices = @transform_11, window_bounds = array<i64: 128, 128>}, {pipeline_mode = #tpu.pipeline_mode<synchronous>, transform_indices = @transform_12, window_bounds = array<i64: 1, 128>}, {pipeline_mode = #tpu.pipeline_mode<synchronous>, transform_indices = @transform_13, window_bounds = array<i64: 128, 128>}, {pipeline_mode = #tpu.pipeline_mode<synchronous>, transform_indices = @transform_14, window_bounds = array<i64: 1, 128>}, {transform_indices = @transform_15, window_bounds = array<i64: 16, 128>}]} {
    %c0 = arith.constant 0 : index
    %c0_0 = arith.constant 0 : index
    %0 = vector.load %arg1[%c0, %c0_0] : memref<16x128xf32, #tpu.memory_space<vmem>>, vector<16x128xf32>
    %c0_1 = arith.constant 0 : index
    %c0_2 = arith.constant 0 : index
    %1 = vector.load %arg3[%c0_1, %c0_2] : memref<1x128xf32, #tpu.memory_space<vmem>>, vector<1x128xf32>
    %c0_3 = arith.constant 0 : index
    %c0_4 = arith.constant 0 : index
    %2 = vector.load %arg5[%c0_3, %c0_4] : memref<1x128xf32, #tpu.memory_space<vmem>>, vector<1x128xf32>
    %c0_5 = arith.constant 0 : index
    %c0_6 = arith.constant 0 : index
    %3 = vector.load %arg7[%c0_5, %c0_6] : memref<1x128xf32, #tpu.memory_space<vmem>>, vector<1x128xf32>
    %c0_7 = arith.constant 0 : index
    %c0_8 = arith.constant 0 : index
    %4 = vector.load %arg9[%c0_7, %c0_8] : memref<1x128xf32, #tpu.memory_space<vmem>>, vector<1x128xf32>
    %c0_9 = arith.constant 0 : index
    %c0_10 = arith.constant 0 : index
    %5 = vector.load %arg11[%c0_9, %c0_10] : memref<1x128xf32, #tpu.memory_space<vmem>>, vector<1x128xf32>
    %c0_11 = arith.constant 0 : index
    %c0_12 = arith.constant 0 : index
    %6 = vector.load %arg13[%c0_11, %c0_12] : memref<1x128xf32, #tpu.memory_space<vmem>>, vector<1x128xf32>
    %c0_13 = arith.constant 0 : index
    %c0_14 = arith.constant 0 : index
    %7 = vector.load %arg15[%c0_13, %c0_14] : memref<1x128xf32, #tpu.memory_space<vmem>>, vector<1x128xf32>
    %8 = arith.truncf %0 : vector<16x128xf32> to vector<16x128xbf16>
    %c0_15 = arith.constant 0 : index
    %c0_16 = arith.constant 0 : index
    %9 = vector.load %arg2[%c0_15, %c0_16] : memref<128x128xbf16, #tpu.memory_space<vmem>>, vector<128x128xbf16>
    %cst = arith.constant dense<0.000000e+00> : vector<16x128xf32>
    %10 = tpu.matmul %8, %9, %cst {dimension_numbers = #tpu.dot_dimension_numbers<[1], [0], [0], [1], [0, 0, 1, 1], [], []>} : vector<16x128xbf16>, vector<128x128xbf16>, vector<16x128xf32> -> vector<16x128xf32>
    %11 = vector.broadcast %1 : vector<1x128xf32> to vector<16x128xf32>
    %12 = arith.addf %10, %11 : vector<16x128xf32>
    %cst_17 = arith.constant 0.000000e+00 : f32
    %13 = vector.broadcast %cst_17 : f32 to vector<16x128xf32>
    %14 = arith.maximumf %12, %13 : vector<16x128xf32>
    %15 = arith.truncf %14 : vector<16x128xf32> to vector<16x128xbf16>
    %c0_18 = arith.constant 0 : index
    %c0_19 = arith.constant 0 : index
    %16 = vector.load %arg4[%c0_18, %c0_19] : memref<128x128xbf16, #tpu.memory_space<vmem>>, vector<128x128xbf16>
    %cst_20 = arith.constant dense<0.000000e+00> : vector<16x128xf32>
    %17 = tpu.matmul %15, %16, %cst_20 {dimension_numbers = #tpu.dot_dimension_numbers<[1], [0], [0], [1], [0, 0, 1, 1], [], []>} : vector<16x128xbf16>, vector<128x128xbf16>, vector<16x128xf32> -> vector<16x128xf32>
    %18 = vector.broadcast %2 : vector<1x128xf32> to vector<16x128xf32>
    %19 = arith.addf %17, %18 : vector<16x128xf32>
    %cst_21 = arith.constant 0.000000e+00 : f32
    %20 = vector.broadcast %cst_21 : f32 to vector<16x128xf32>
    %21 = arith.maximumf %19, %20 : vector<16x128xf32>
    %22 = arith.truncf %21 : vector<16x128xf32> to vector<16x128xbf16>
    %c0_22 = arith.constant 0 : index
    %c0_23 = arith.constant 0 : index
    %23 = vector.load %arg6[%c0_22, %c0_23] : memref<128x128xbf16, #tpu.memory_space<vmem>>, vector<128x128xbf16>
    %cst_24 = arith.constant dense<0.000000e+00> : vector<16x128xf32>
    %24 = tpu.matmul %22, %23, %cst_24 {dimension_numbers = #tpu.dot_dimension_numbers<[1], [0], [0], [1], [0, 0, 1, 1], [], []>} : vector<16x128xbf16>, vector<128x128xbf16>, vector<16x128xf32> -> vector<16x128xf32>
    %25 = vector.broadcast %3 : vector<1x128xf32> to vector<16x128xf32>
    %26 = arith.addf %24, %25 : vector<16x128xf32>
    %cst_25 = arith.constant 0.000000e+00 : f32
    %27 = vector.broadcast %cst_25 : f32 to vector<16x128xf32>
    %28 = arith.maximumf %26, %27 : vector<16x128xf32>
    %29 = arith.truncf %28 : vector<16x128xf32> to vector<16x128xbf16>
    %c0_26 = arith.constant 0 : index
    %c0_27 = arith.constant 0 : index
    %30 = vector.load %arg8[%c0_26, %c0_27] : memref<128x128xbf16, #tpu.memory_space<vmem>>, vector<128x128xbf16>
    %cst_28 = arith.constant dense<0.000000e+00> : vector<16x128xf32>
    %31 = tpu.matmul %29, %30, %cst_28 {dimension_numbers = #tpu.dot_dimension_numbers<[1], [0], [0], [1], [0, 0, 1, 1], [], []>} : vector<16x128xbf16>, vector<128x128xbf16>, vector<16x128xf32> -> vector<16x128xf32>
    %32 = vector.broadcast %4 : vector<1x128xf32> to vector<16x128xf32>
    %33 = arith.addf %31, %32 : vector<16x128xf32>
    %cst_29 = arith.constant 0.000000e+00 : f32
    %34 = vector.broadcast %cst_29 : f32 to vector<16x128xf32>
    %35 = arith.maximumf %33, %34 : vector<16x128xf32>
    %36 = arith.truncf %35 : vector<16x128xf32> to vector<16x128xbf16>
    %c0_30 = arith.constant 0 : index
    %c0_31 = arith.constant 0 : index
    %37 = vector.load %arg10[%c0_30, %c0_31] : memref<128x128xbf16, #tpu.memory_space<vmem>>, vector<128x128xbf16>
    %cst_32 = arith.constant dense<0.000000e+00> : vector<16x128xf32>
    %38 = tpu.matmul %36, %37, %cst_32 {dimension_numbers = #tpu.dot_dimension_numbers<[1], [0], [0], [1], [0, 0, 1, 1], [], []>} : vector<16x128xbf16>, vector<128x128xbf16>, vector<16x128xf32> -> vector<16x128xf32>
    %39 = vector.broadcast %5 : vector<1x128xf32> to vector<16x128xf32>
    %40 = arith.addf %38, %39 : vector<16x128xf32>
    %cst_33 = arith.constant 0.000000e+00 : f32
    %41 = vector.broadcast %cst_33 : f32 to vector<16x128xf32>
    %42 = arith.maximumf %40, %41 : vector<16x128xf32>
    %43 = arith.truncf %42 : vector<16x128xf32> to vector<16x128xbf16>
    %c0_34 = arith.constant 0 : index
    %c0_35 = arith.constant 0 : index
    %44 = vector.load %arg12[%c0_34, %c0_35] : memref<128x128xbf16, #tpu.memory_space<vmem>>, vector<128x128xbf16>
    %cst_36 = arith.constant dense<0.000000e+00> : vector<16x128xf32>
    %45 = tpu.matmul %43, %44, %cst_36 {dimension_numbers = #tpu.dot_dimension_numbers<[1], [0], [0], [1], [0, 0, 1, 1], [], []>} : vector<16x128xbf16>, vector<128x128xbf16>, vector<16x128xf32> -> vector<16x128xf32>
    %46 = vector.broadcast %6 : vector<1x128xf32> to vector<16x128xf32>
    %47 = arith.addf %45, %46 : vector<16x128xf32>
    %cst_37 = arith.constant 0.000000e+00 : f32
    %48 = vector.broadcast %cst_37 : f32 to vector<16x128xf32>
    %49 = arith.maximumf %47, %48 : vector<16x128xf32>
    %50 = arith.truncf %49 : vector<16x128xf32> to vector<16x128xbf16>
    %c0_38 = arith.constant 0 : index
    %c0_39 = arith.constant 0 : index
    %51 = vector.load %arg14[%c0_38, %c0_39] : memref<128x128xbf16, #tpu.memory_space<vmem>>, vector<128x128xbf16>
    %cst_40 = arith.constant dense<0.000000e+00> : vector<16x128xf32>
    %52 = tpu.matmul %50, %51, %cst_40 {dimension_numbers = #tpu.dot_dimension_numbers<[1], [0], [0], [1], [0, 0, 1, 1], [], []>} : vector<16x128xbf16>, vector<128x128xbf16>, vector<16x128xf32> -> vector<16x128xf32>
    %53 = vector.broadcast %7 : vector<1x128xf32> to vector<16x128xf32>
    %54 = arith.addf %52, %53 : vector<16x128xf32>
    %cst_41 = arith.constant dense<0xFF800000> : vector<16xf32>
    %55 = vector.multi_reduction <maximumf>, %54, %cst_41 [1] : vector<16x128xf32> to vector<16xf32>
    %56 = vector.shape_cast %55 : vector<16xf32> to vector<16x1xf32>
    %57 = vector.broadcast %56 : vector<16x1xf32> to vector<16x128xf32>
    %58 = arith.subf %54, %57 : vector<16x128xf32>
    %59 = math.exp %58 : vector<16x128xf32>
    %cst_42 = arith.constant dense<0.000000e+00> : vector<16xf32>
    %60 = vector.multi_reduction <add>, %59, %cst_42 [1] : vector<16x128xf32> to vector<16xf32>
    %61 = vector.shape_cast %60 : vector<16xf32> to vector<16x1xf32>
    %cst_43 = arith.constant 1.000000e+00 : f32
    %62 = vector.broadcast %cst_43 : f32 to vector<16x1xf32>
    %63 = arith.divf %62, %61 : vector<16x1xf32>
    %64 = vector.broadcast %63 : vector<16x1xf32> to vector<16x128xf32>
    %65 = arith.mulf %59, %64 : vector<16x128xf32>
    %c0_44 = arith.constant 0 : index
    %c0_45 = arith.constant 0 : index
    %66 = vector.load %arg16[%c0_44, %c0_45] : memref<16x128xf32, #tpu.memory_space<vmem>>, vector<16x128xf32>
    tpu.vector_store %arg16[%c0_44, %c0_45], %65 {strides = array<i32>} : memref<16x128xf32, #tpu.memory_space<vmem>>, vector<16x128xf32>,
    return
  }
  func.func @transform_0(%arg0: i32) -> (i32, i32) {
    %c0_i32 = arith.constant 0 : i32
    %c0_i32_0 = arith.constant 0 : i32
    return %arg0, %c0_i32 : i32, i32
  }
  func.func @transform_1(%arg0: i32) -> (i32, i32) {
    %c0_i32 = arith.constant 0 : i32
    %c0_i32_0 = arith.constant 0 : i32
    %c0_i32_1 = arith.constant 0 : i32
    return %c0_i32, %c0_i32_0 : i32, i32
  }
  func.func @transform_2(%arg0: i32) -> (i32, i32) {
    %c0_i32 = arith.constant 0 : i32
    %c0_i32_0 = arith.constant 0 : i32
    %c0_i32_1 = arith.constant 0 : i32
    return %c0_i32, %c0_i32_0 : i32, i32
  }
  func.func @transform_3(%arg0: i32) -> (i32, i32) {
    %c0_i32 = arith.constant 0 : i32
    %c0_i32_0 = arith.constant 0 : i32
    %c0_i32_1 = arith.constant 0 : i32
    return %c0_i32, %c0_i32_0 : i32, i32
  }
  func.func @transform_4(%arg0: i32) -> (i32, i32) {
    %c0_i32 = arith.constant 0 : i32
    %c0_i32_0 = arith.constant 0 : i32
    %c0_i32_1 = arith.constant 0 : i32
    return %c0_i32, %c0_i32_0 : i32, i32
  }
  func.func @transform_5(%arg0: i32) -> (i32, i32) {
    %c0_i32 = arith.constant 0 : i32
    %c0_i32_0 = arith.constant 0 : i32
    %c0_i32_1 = arith.constant 0 : i32
    return %c0_i32, %c0_i32_0 : i32, i32
  }
  func.func @transform_6(%arg0: i32) -> (i32, i32) {
    %c0_i32 = arith.constant 0 : i32
    %c0_i32_0 = arith.constant 0 : i32
    %c0_i32_1 = arith.constant 0 : i32
    return %c0_i32, %c0_i32_0 : i32, i32
  }
  func.func @transform_7(%arg0: i32) -> (i32, i32) {
    %c0_i32 = arith.constant 0 : i32
    %c0_i32_0 = arith.constant 0 : i32
    %c0_i32_1 = arith.constant 0 : i32
    return %c0_i32, %c0_i32_0 : i32, i32
  }
  func.func @transform_8(%arg0: i32) -> (i32, i32) {
    %c0_i32 = arith.constant 0 : i32
    %c0_i32_0 = arith.constant 0 : i32
    %c0_i32_1 = arith.constant 0 : i32
    return %c0_i32, %c0_i32_0 : i32, i32
  }
  func.func @transform_9(%arg0: i32) -> (i32, i32) {
    %c0_i32 = arith.constant 0 : i32
    %c0_i32_0 = arith.constant 0 : i32
    %c0_i32_1 = arith.constant 0 : i32
    return %c0_i32, %c0_i32_0 : i32, i32
  }
  func.func @transform_10(%arg0: i32) -> (i32, i32) {
    %c0_i32 = arith.constant 0 : i32
    %c0_i32_0 = arith.constant 0 : i32
    %c0_i32_1 = arith.constant 0 : i32
    return %c0_i32, %c0_i32_0 : i32, i32
  }
  func.func @transform_11(%arg0: i32) -> (i32, i32) {
    %c0_i32 = arith.constant 0 : i32
    %c0_i32_0 = arith.constant 0 : i32
    %c0_i32_1 = arith.constant 0 : i32
    return %c0_i32, %c0_i32_0 : i32, i32
  }
  func.func @transform_12(%arg0: i32) -> (i32, i32) {
    %c0_i32 = arith.constant 0 : i32
    %c0_i32_0 = arith.constant 0 : i32
    %c0_i32_1 = arith.constant 0 : i32
    return %c0_i32, %c0_i32_0 : i32, i32
  }
  func.func @transform_13(%arg0: i32) -> (i32, i32) {
    %c0_i32 = arith.constant 0 : i32
    %c0_i32_0 = arith.constant 0 : i32
    %c0_i32_1 = arith.constant 0 : i32
    return %c0_i32, %c0_i32_0 : i32, i32
  }
  func.func @transform_14(%arg0: i32) -> (i32, i32) {
    %c0_i32 = arith.constant 0 : i32
    %c0_i32_0 = arith.constant 0 : i32
    %c0_i32_1 = arith.constant 0 : i32
    return %c0_i32, %c0_i32_0 : i32, i32
  }
  func.func @transform_15(%arg0: i32) -> (i32, i32) {
    %c0_i32 = arith.constant 0 : i32
    %c0_i32_0 = arith.constant 0 : i32
    return %arg0, %c0_i32 : i32, i32
  }
}

</mosaic_0001>

<bundles_post_ra>
// kernel: tpu_custom_call.1
= control target key start
LH: loop header
LB: loop body
LE: loop exit
PB: predicated region body
PF: predicated region fallthrough
CT: control target
= control target key end

     0   :  { %20 = vsyncpa [#allocation3], 0  ;;  %s1546_s0 = inlined_call_operand.hbm [shape: f32[16,128], index: 0, kind: input, shape index: {}]   ;;  %s1547_s1 = inlined_call_operand.hbm [shape: bf16[128,128], index: 1, kind: input, shape index: {}]   ;;  %s1548_s2 = inlined_call_operand.vmem [shape: f32[1,128], index: 2, kind: input, shape index: {}]   ;;  %s1549_s3 = inlined_call_operand.hbm [shape: bf16[128,128], index: 3, kind: input, shape index: {}]   ;;  %s1550_s4 = inlined_call_operand.vmem [shape: f32[1,128], index: 4, kind: input, shape index: {}]   ;;  %s1551_s5 = inlined_call_operand.hbm [shape: bf16[128,128], index: 5, kind: input, shape index: {}]   ;;  %s1552_s6 = inlined_call_operand.vmem [shape: f32[1,128], index: 6, kind: input, shape index: {}]   ;;  %s1553_s7 = inlined_call_operand.hbm [shape: bf16[128,128], index: 7, kind: input, shape index: {}]   ;;  %s1554_s8 = inlined_call_operand.vmem [shape: f32[1,128], index: 8, kind: input, shape index: {}]   ;;  %s1555_s9 = inlined_call_operand.hbm [shape: bf16[128,128], index: 9, kind: input, shape index: {}]   ;;  %s1556_s10 = inlined_call_operand.vmem [shape: f32[1,128], index: 10, kind: input, shape index: {}]   ;;  %s1557_s11 = inlined_call_operand.hbm [shape: bf16[128,128], index: 11, kind: input, shape index: {}]   ;;  %s1558_s12 = inlined_call_operand.vmem [shape: f32[1,128], index: 12, kind: input, shape index: {}]   ;;  %s1559_s13 = inlined_call_operand.hbm [shape: bf16[128,128], index: 13, kind: input, shape index: {}]   ;;  %s1560_s14 = inlined_call_operand.vmem [shape: f32[1,128], index: 14, kind: input, shape index: {}]   ;;  %s1561_s15 = inlined_call_operand.hbm [shape: f32[16,128], index: 15, kind: output, shape index: {}]  }
   0x1   :  { %21 = vsyncpa [#allocation6], 0 }
   0x2   :  { %22 = vsyncpa [#allocation9], 0 }
   0x3   :  { %23 = vsyncpa [#allocation12], 0 }
   0x4   :  { %24 = vsyncpa [#allocation15], 0  ;;  %s43_s20 = sshll.u32 %s1547_s1, 4  ;;  %s44_s20 = int_to_ptr.hbm [resolvable:$true] %s43_s20 }
   0x5   :  { %25 = vsyncpa [#allocation4], 0  ;;  %s1378_s21 = smov [#allocation5]   ;;  %s73_s25 = sshll.u32 %s1551_s5, 4  ;;  %s74_s25 = int_to_ptr.hbm [resolvable:$true] %s73_s25 }
   0x6   :  { %s45_s22 = sshll.u32 %s1378_s21, 4  ;;  %s1379_s26 = smov 64   ;;  %s46_s22 = int_to_ptr.vmem [resolvable:$true] %s45_s22 }
   0x7   :  { %s1380_s27 = smov 4   ;;  %s1381_s28 = smov [#allocation8]  }
   0x8   :  { %51 = dma.hbm_to_vmem [thread:$0]  %s44_s20, 1024, %s46_s22, [#allocation6], %s1379_s26, %s1379_s26, %s1380_s27  }
   0x9   :  { %s75_s29 = sshll.u32 %s1381_s28, 4  ;;  %s103_s16 = sshll.u32 %s1555_s9, 4  ;;  %s76_s29 = int_to_ptr.vmem [resolvable:$true] %s75_s29  ;;  %s104_s16 = int_to_ptr.hbm [resolvable:$true] %s103_s16 }
   0xa   :  { %81 = dma.hbm_to_vmem [thread:$0]  %s74_s25, 1024, %s76_s29, [#allocation9], %s1379_s26, %s1379_s26, %s1380_s27  }
   0xb   :  { %s30_s18 = sshll.u32 %s1546_s0, 4  ;;  %s1382_s19 = smov [#allocation11]   ;;  %s31_s18 = int_to_ptr.hbm [resolvable:$true] %s30_s18 }
   0xc   :  { %s105_s21 = sshll.u32 %s1382_s19, 4  ;;  %s1383_s20 = smov [#allocation2]   ;;  %s106_s21 = int_to_ptr.vmem [resolvable:$true] %s105_s21 }
   0xd   :  { %111 = dma.hbm_to_vmem [thread:$0]  %s104_s16, 1024, %s106_s21, [#allocation12], %s1379_s26, %s1379_s26, %s1380_s27  }
   0xe   :  { %s32_s9 = sshll.u32 %s1383_s20, 4  ;;  %s1384_s22 = smov 128   ;;  %s33_s9 = int_to_ptr.vmem [resolvable:$true] %s32_s9 }
   0xf   :  { %s1385_s23 = smov 8   ;;  %s58_s0 = sshll.u32 %s1549_s3, 4  ;;  %s59_s0 = int_to_ptr.hbm [resolvable:$true] %s58_s0 }
  0x10   :  { %38 = dma.hbm_to_vmem [thread:$0]  %s31_s18, 256, %s33_s9, [#allocation3], %s1384_s22, %s1384_s22, %s1385_s23  }
  0x11   :  { %s1386_s28 = smov [#allocation7]   ;;  %s88_s16 = sshll.u32 %s1553_s7, 4  ;;  %s89_s16 = int_to_ptr.hbm [resolvable:$true] %s88_s16 }
  0x12   :  { %s60_s29 = sshll.u32 %s1386_s28, 4  ;;  %s1387_s5 = smov [#allocation10]   ;;  %s61_s29 = int_to_ptr.vmem [resolvable:$true] %s60_s29 }
  0x13   :  { %66 = dma.hbm_to_vmem [thread:$0]  %s59_s0, 1024, %s61_s29, [#allocation6], %s1379_s26, %s1379_s26, %s1380_s27  }
  0x14   :  { %s90_s17 = sshll.u32 %s1387_s5, 4  ;;  %s118_s21 = sshll.u32 %s1557_s11, 4  ;;  %s91_s17 = int_to_ptr.vmem [resolvable:$true] %s90_s17  ;;  %s119_s21 = int_to_ptr.hbm [resolvable:$true] %s118_s21 }
  0x15   :  { %96 = dma.hbm_to_vmem [thread:$0]  %s89_s16, 1024, %s91_s17, [#allocation9], %s1379_s26, %s1379_s26, %s1380_s27  }
  0x16   :  { %s133_s7 = sshll.u32 %s1559_s13, 4  ;;  %s1388_s9 = smov [#allocation13]   ;;  %s134_s7 = int_to_ptr.hbm [resolvable:$true] %s133_s7 }
  0x17   :  { %s120_s24 = sshll.u32 %s1388_s9, 4  ;;  %s1389_s25 = smov [#allocation14]   ;;  %s121_s24 = int_to_ptr.vmem [resolvable:$true] %s120_s24 }
  0x18   :  { %126 = dma.hbm_to_vmem [thread:$0]  %s119_s21, 1024, %s121_s24, [#allocation12], %s1379_s26, %s1379_s26, %s1380_s27  }
  0x19   :  { %s135_s11 = sshll.u32 %s1389_s25, 4  ;;  %s136_s11 = int_to_ptr.vmem [resolvable:$true] %s135_s11 }
  0x1a   :  { %141 = dma.hbm_to_vmem [thread:$0]  %s134_s7, 1024, %s136_s11, [#allocation15], %s1379_s26, %s1379_s26, %s1380_s27  }
  0x1b   :  { %1366 = dma.done.wait [#allocation3], 256  }
  0x1c   :  { %1367 = vsyncadd [#allocation3], 4294967040 }
  0x1d   :  { %1368 = dma.done.wait [#allocation6], 2048  }
  0x1e   :  { %1369 = vsyncadd [#allocation6], 4294965248 }
  0x1f   :  { %1370 = dma.done.wait [#allocation9], 2048  }
  0x20   :  { %1371 = vsyncadd [#allocation9], 4294965248 }
  0x21   :  { %1372 = dma.done.wait [#allocation12], 2048  }
  0x22   :  { %1373 = vsyncadd [#allocation12], 4294965248 }
  0x23   :  { %1374 = dma.done.wait [#allocation15], 1024  }
  0x24   :  { %1375 = vsyncadd [#allocation15], 4294966272  ;;  %v1073_v0 = vld [vmem:[#allocation5 + $0x38] sm:$0xff]  ;;  %v1072_v1 = vld [vmem:[#allocation5 + $0x30] sm:$0xff]  ;;  %s825_s18 = sshll.u32 %s1561_s15, 4  ;;  %s826_s18 = int_to_ptr.hbm [resolvable:$true] %s825_s18 }
  0x25   :  { %253 = vmatpush.bf16.msra.mxu0 %v1073_v0  ;;  %v1081_v2 = vld [vmem:[#allocation7 + $0x38] sm:$0xff]  ;;  %v1071_v3 = vld [vmem:[#allocation5 + $0x28] sm:$0xff]  ;;  %v1080_v4 = vld [vmem:[#allocation7 + $0x30] sm:$0xff] }
  0x26   :  { %337 = vmatpush.bf16.msra.mxu1 %v1081_v2  ;;  %v1079_v5 = vld [vmem:[#allocation7 + $0x28] sm:$0xff]  ;;  %v1070_v6 = vld [vmem:[#allocation5 + $0x20] sm:$0xff]  ;;  %v1069_v8 = vld [vmem:[#allocation5 + $0x18] sm:$0xff] }
  0x27   :  { %v1078_v7 = vld [vmem:[#allocation7 + $0x20] sm:$0xff]  ;;  %v1068_v9 = vld [vmem:[#allocation5 + $0x10] sm:$0xff]  ;;  %v1067_v10 = vld [vmem:[#allocation5 + $0x8] sm:$0xff] }
  0x28   :  { %v1066_v11 = vld [vmem:[#allocation5] sm:$0xff]  ;;  %v176_v12 = vld [vmem:[#allocation2] sm:$0xff]  ;;  %v177_v13 = vld [vmem:[#allocation2 + $0x8] sm:$0xff] }
  0x29   :  { %254 = vmatpush.bf16.msra.mxu0 %v1072_v1  ;;  %v185_v14 = vpack.c.bf16 %v177_v13, %v176_v12  ;;  %v1077_v15 = vld [vmem:[#allocation7 + $0x18] sm:$0xff]  ;;  %v1076_v16 = vld [vmem:[#allocation7 + $0x10] sm:$0xff]  ;;  %v1075_v17 = vld [vmem:[#allocation7 + $0x8] sm:$0xff] }
  0x2a   :  { %338 = vmatpush.bf16.msra.mxu1 %v1080_v4  ;;  %v1074_v18 = vld [vmem:[#allocation7] sm:$0xff]  ;;  %v1089_v19 = vld [vmem:[#allocation8 + $0x38] sm:$0xff]  ;;  %v1088_v20 = vld [vmem:[#allocation8 + $0x30] sm:$0xff] }
  0x2b   :  { %421 = vmatpush.bf16.msra.mxu2 %v1089_v19  ;;  %v1087_v21 = vld [vmem:[#allocation8 + $0x28] sm:$0xff]  ;;  %v1086_v22 = vld [vmem:[#allocation8 + $0x20] sm:$0xff]  ;;  %v1135_v24 = vld [vmem:[%s1548_s2] ss:$0 sm:$0xff] }
  0x2c   :  { %v1085_v31 = vld [vmem:[#allocation8 + $0x18] sm:$0xff]  ;;  %v1084_v32 = vld [vmem:[#allocation8 + $0x10] sm:$0xff]  ;;  %v1083_v33 = vld [vmem:[#allocation8 + $0x8] sm:$0xff] }
  0x2d   :  { %255 = vmatpush.bf16.msra.mxu0 %v1071_v3  ;;  %v1082_v34 = vld [vmem:[#allocation8] sm:$0xff]  ;;  %v1097_v35 = vld [vmem:[#allocation10 + $0x38] sm:$0xff]  ;;  %v1096_v36 = vld [vmem:[#allocation10 + $0x30] sm:$0xff] }
  0x2e   :  { %339 = vmatpush.bf16.msra.mxu1 %v1079_v5  ;;  %505 = vmatpush.bf16.msra.mxu3 %v1097_v35  ;;  %v1095_v37 = vld [vmem:[#allocation10 + $0x28] sm:$0xff]  ;;  %v1094_v38 = vld [vmem:[#allocation10 + $0x20] sm:$0xff]  ;;  %v1136_v40 = vld [vmem:[%s1550_s4] ss:$0 sm:$0xff] }
  0x2f   :  { %422 = vmatpush.bf16.msra.mxu2 %v1088_v20  ;;  %v1093_v47 = vld [vmem:[#allocation10 + $0x18] sm:$0xff]  ;;  %v1092_v48 = vld [vmem:[#allocation10 + $0x10] sm:$0xff]  ;;  %v1091_v49 = vld [vmem:[#allocation10 + $0x8] sm:$0xff] }
  0x30   :  { %v1090_v50 = vld [vmem:[#allocation10] sm:$0xff]  ;;  %v1105_v51 = vld [vmem:[#allocation11 + $0x38] sm:$0xff]  ;;  %v1104_v52 = vld [vmem:[#allocation11 + $0x30] sm:$0xff] }
  0x31   :  { %256 = vmatpush.bf16.msra.mxu0 %v1070_v6  ;;  %v1103_v53 = vld [vmem:[#allocation11 + $0x28] sm:$0xff]  ;;  %v1102_v54 = vld [vmem:[#allocation11 + $0x20] sm:$0xff]  ;;  %v1137_v56 = vld [vmem:[%s1552_s6] ss:$0 sm:$0xff] }
  0x32   :  { %340 = vmatpush.bf16.msra.mxu1 %v1078_v7  ;;  %506 = vmatpush.bf16.msra.mxu3 %v1096_v36  ;;  %v1101_v63 = vld [vmem:[#allocation11 + $0x18] sm:$0xff]  ;;  %v1100_v0 = vld [vmem:[#allocation11 + $0x10] sm:$0xff]  ;;  %v1099_v1 = vld [vmem:[#allocation11 + $0x8] sm:$0xff] }
  0x33   :  { %423 = vmatpush.bf16.msra.mxu2 %v1087_v21  ;;  %v1098_v2 = vld [vmem:[#allocation11] sm:$0xff]  ;;  %v1113_v3 = vld [vmem:[#allocation13 + $0x38] sm:$0xff]  ;;  %v1112_v4 = vld [vmem:[#allocation13 + $0x30] sm:$0xff] }
  0x34   :  { %v1111_v5 = vld [vmem:[#allocation13 + $0x28] sm:$0xff]  ;;  %v1110_v6 = vld [vmem:[#allocation13 + $0x20] sm:$0xff]  ;;  %v1121_v19 = vld [vmem:[#allocation14 + $0x38] sm:$0xff] }
  0x35   :  { %257 = vmatpush.bf16.msra.mxu0 %v1069_v8  ;;  %v1138_v8 = vld [vmem:[%s1554_s8] ss:$0 sm:$0xff]  ;;  %v1119_v21 = vld [vmem:[#allocation14 + $0x28] sm:$0xff] }
  0x36   :  { %341 = vmatpush.bf16.msra.mxu1 %v1077_v15  ;;  %507 = vmatpush.bf16.msra.mxu3 %v1095_v37  ;;  %v1109_v15 = vld [vmem:[#allocation13 + $0x18] sm:$0xff]  ;;  %v1120_v20 = vld [vmem:[#allocation14 + $0x30] sm:$0xff] }
  0x37   :  { %424 = vmatpush.bf16.msra.mxu2 %v1086_v22  ;;  %v1118_v22 = vld [vmem:[#allocation14 + $0x20] sm:$0xff]  ;;  %v1140_v36 = vld [vmem:[%s1558_s12] ss:$0 sm:$0xff]  ;;  %s1390_s12 = smov [#allocation16]  }
  0x39   :  { %258 = vmatpush.bf16.msra.mxu0 %v1068_v9 }
  0x3a   :  { %342 = vmatpush.bf16.msra.mxu1 %v1076_v16  ;;  %508 = vmatpush.bf16.msra.mxu3 %v1094_v38  ;;  %v1108_v16 = vld [vmem:[#allocation13 + $0x10] sm:$0xff] }
  0x3b   :  { %425 = vmatpush.bf16.msra.mxu2 %v1085_v31  ;;  %v1117_v31 = vld [vmem:[#allocation14 + $0x18] sm:$0xff] }
  0x3d   :  { %259 = vmatpush.bf16.msra.mxu0 %v1067_v10 }
  0x3e   :  { %343 = vmatpush.bf16.msra.mxu1 %v1075_v17  ;;  %509 = vmatpush.bf16.msra.mxu3 %v1093_v47  ;;  %v1107_v17 = vld [vmem:[#allocation13 + $0x8] sm:$0xff] }
  0x3f   :  { %426 = vmatpush.bf16.msra.mxu2 %v1084_v32  ;;  %v1116_v32 = vld [vmem:[#allocation14 + $0x10] sm:$0xff] }
  0x41   :  { %260 = vmatpush.bf16.msra.mxu0 %v1066_v11 }
  0x42   :  { %344 = vmatpush.bf16.msra.mxu1 %v1074_v18  ;;  %510 = vmatpush.bf16.msra.mxu3 %v1092_v48  ;;  %v1106_v18 = vld [vmem:[#allocation13] sm:$0xff] }
  0x43   :  { %427 = vmatpush.bf16.msra.mxu2 %v1083_v33  ;;  %v1115_v33 = vld [vmem:[#allocation14 + $0x8] sm:$0xff] }
  0x44   :  { %261 = vmatmul.bf16.vlgmr.msra.gmra.mxu0 %v185_v14 }
  0x45   :  { %589 = vmatpush.bf16.msrb.mxu0 %v1105_v51 }
  0x46   :  { %511 = vmatpush.bf16.msra.mxu3 %v1091_v49  ;;  %673 = vmatpush.bf16.msrb.mxu1 %v1113_v3 }
  0x47   :  { %428 = vmatpush.bf16.msra.mxu2 %v1082_v34  ;;  %v1114_v34 = vld [vmem:[#allocation14] sm:$0xff] }
  0x49   :  { %590 = vmatpush.bf16.msrb.mxu0 %v1104_v52 }
  0x4a   :  { %512 = vmatpush.bf16.msra.mxu3 %v1090_v50  ;;  %674 = vmatpush.bf16.msrb.mxu1 %v1112_v4 }
  0x4b   :  { %757 = vmatpush.bf16.msrb.mxu2 %v1121_v19 }
  0x4d   :  { %591 = vmatpush.bf16.msrb.mxu0 %v1103_v53 }
  0x4e   :  { %675 = vmatpush.bf16.msrb.mxu1 %v1111_v5 }
  0x4f   :  { %758 = vmatpush.bf16.msrb.mxu2 %v1120_v20 }
  0x51   :  { %592 = vmatpush.bf16.msrb.mxu0 %v1102_v54 }
  0x52   :  { %676 = vmatpush.bf16.msrb.mxu1 %v1110_v6 }
  0x53   :  { %759 = vmatpush.bf16.msrb.mxu2 %v1119_v21 }
  0x55   :  { %593 = vmatpush.bf16.msrb.mxu0 %v1101_v63 }
  0x56   :  { %677 = vmatpush.bf16.msrb.mxu1 %v1109_v15 }
  0x57   :  { %760 = vmatpush.bf16.msrb.mxu2 %v1118_v22 }
  0x59   :  { %594 = vmatpush.bf16.msrb.mxu0 %v1100_v0 }
  0x5a   :  { %678 = vmatpush.bf16.msrb.mxu1 %v1108_v16 }
  0x5b   :  { %761 = vmatpush.bf16.msrb.mxu2 %v1117_v31 }
  0x5d   :  { %595 = vmatpush.bf16.msrb.mxu0 %v1099_v1 }
  0x5e   :  { %679 = vmatpush.bf16.msrb.mxu1 %v1107_v17 }
  0x5f   :  { %762 = vmatpush.bf16.msrb.mxu2 %v1116_v32 }
  0x61   :  { %596 = vmatpush.bf16.msrb.mxu0 %v1098_v2 }
  0x62   :  { %680 = vmatpush.bf16.msrb.mxu1 %v1106_v18 }
  0x63   :  { %763 = vmatpush.bf16.msrb.mxu2 %v1115_v33 }
  0x67   :  { %764 = vmatpush.bf16.msrb.mxu2 %v1114_v34 }
  0xc1   :  { %v262_v23 = vpop.f32.mrf.mxu0 }
  0xc2   :  { %v263_v25 = vadd.f32 %v1135_v24, %v262_v23 }
  0xc4   :  { %v267_v28 = vmax.f32 %v263_v25, 0.0 }
  0xc9   :  { %v264_v26 = vpop.f32.mrf.mxu0 }
  0xca   :  { %v265_v27 = vadd.f32 %v1135_v24, %v264_v26  ;;  %v1139_v24 = vld [vmem:[%s1556_s10] ss:$0 sm:$0xff] }
  0xcc   :  { %v268_v29 = vmax.f32 %v265_v27, 0.0 }
  0xce   :  { %v269_v30 = vpack.c.bf16 %v268_v29, %v267_v28 }
  0xd0   :  { %345 = vmatmul.bf16.vlgmr.msra.gmra.mxu1 %v269_v30 }
 0x14d   :  { %v346_v39 = vpop.f32.mrf.mxu1 }
 0x14e   :  { %v347_v41 = vadd.f32 %v1136_v40, %v346_v39 }
 0x150   :  { %v351_v44 = vmax.f32 %v347_v41, 0.0 }
 0x155   :  { %v348_v42 = vpop.f32.mrf.mxu1 }
 0x156   :  { %v349_v43 = vadd.f32 %v1136_v40, %v348_v42 }
 0x158   :  { %v352_v45 = vmax.f32 %v349_v43, 0.0  ;;  %v1141_v43 = vld [vmem:[%s1560_s14] ss:$0 sm:$0xff]  ;;  %s823_s14 = sshll.u32 %s1390_s12, 4  ;;  %s824_s14 = int_to_ptr.vmem [resolvable:$true] %s823_s14 }
 0x15a   :  { %v353_v46 = vpack.c.bf16 %v352_v45, %v351_v44 }
 0x15c   :  { %429 = vmatmul.bf16.vlgmr.msra.gmra.mxu2 %v353_v46 }
 0x1df   :  { %v430_v55 = vpop.f32.mrf.mxu2 }
 0x1e0   :  { %v431_v57 = vadd.f32 %v1137_v56, %v430_v55 }
 0x1e2   :  { %v435_v60 = vmax.f32 %v431_v57, 0.0 }
 0x1e7   :  { %v432_v58 = vpop.f32.mrf.mxu2 }
 0x1e8   :  { %v433_v59 = vadd.f32 %v1137_v56, %v432_v58 }
 0x1ea   :  { %v436_v61 = vmax.f32 %v433_v59, 0.0 }
 0x1ec   :  { %v437_v62 = vpack.c.bf16 %v436_v61, %v435_v60 }
 0x1ee   :  { %513 = vmatmul.bf16.vlgmr.msra.gmra.mxu3 %v437_v62 }
 0x271   :  { %v514_v7 = vpop.f32.mrf.mxu3 }
 0x272   :  { %v515_v9 = vadd.f32 %v1138_v8, %v514_v7 }
 0x274   :  { %v519_v12 = vmax.f32 %v515_v9, 0.0 }
 0x279   :  { %v516_v10 = vpop.f32.mrf.mxu3 }
 0x27a   :  { %v517_v11 = vadd.f32 %v1138_v8, %v516_v10 }
 0x27c   :  { %v520_v13 = vmax.f32 %v517_v11, 0.0 }
 0x27e   :  { %v521_v14 = vpack.c.bf16 %v520_v13, %v519_v12 }
 0x280   :  { %597 = vmatmul.bf16.vlgmr.msrb.gmra.mxu0 %v521_v14 }
 0x2fd   :  { %v598_v23 = vpop.f32.mrf.mxu0 }
 0x2fe   :  { %v599_v25 = vadd.f32 %v1139_v24, %v598_v23 }
 0x300   :  { %v603_v28 = vmax.f32 %v599_v25, 0.0 }
 0x305   :  { %v600_v26 = vpop.f32.mrf.mxu0 }
 0x306   :  { %v601_v27 = vadd.f32 %v1139_v24, %v600_v26 }
 0x308   :  { %v604_v29 = vmax.f32 %v601_v27, 0.0 }
 0x30a   :  { %v605_v30 = vpack.c.bf16 %v604_v29, %v603_v28 }
 0x30c   :  { %681 = vmatmul.bf16.vlgmr.msrb.gmra.mxu1 %v605_v30 }
 0x389   :  { %v682_v35 = vpop.f32.mrf.mxu1 }
 0x38a   :  { %v683_v37 = vadd.f32 %v1140_v36, %v682_v35 }
 0x38c   :  { %v687_v40 = vmax.f32 %v683_v37, 0.0 }
 0x391   :  { %v684_v38 = vpop.f32.mrf.mxu1 }
 0x392   :  { %v685_v39 = vadd.f32 %v1140_v36, %v684_v38 }
 0x394   :  { %v688_v41 = vmax.f32 %v685_v39, 0.0 }
 0x396   :  { %v689_v42 = vpack.c.bf16 %v688_v41, %v687_v40 }
 0x398   :  { %765 = vmatmul.bf16.vlgmr.msrb.gmra.mxu2 %v689_v42 }
 0x41b   :  { %v766_v44 = vpop.f32.mrf.mxu2 }
 0x41c   :  { %v767_v45 = vadd.f32 %v1141_v43, %v766_v44 }
 0x41e   :  { %771 = vmax.xlane.f32.xlu0 %v767_v45 }
 0x423   :  { %v768_v46 = vpop.f32.mrf.mxu2 }
 0x424   :  { %v769_v47 = vadd.f32 %v1141_v43, %v768_v46 }
 0x426   :  { %773 = vmax.xlane.f32.xlu0 %v769_v47 }
 0x491   :  { %v772_v48 = vpop.xlane.xlu0 %771 }
 0x492   :  { %v775_v49 = vsub.f32 %v767_v45, %v772_v48 }
 0x494   :  { %v777_v50 = vmul.f32 1.442695, %v775_v49 }
 0x496   :  { %1142 = vpow2.f32 %v777_v50 }
 0x499   :  { %v774_v51 = vpop.xlane.xlu0 %773 }
 0x49a   :  { %v776_v52 = vsub.f32 %v769_v47, %v774_v51 }
 0x49c   :  { %v1143_v53 = vpop.eup %1142  ;;  %v779_v54 = vmul.f32 1.442695, %v776_v52 }
 0x49d   :  { %781 = vadd.xlane.f32.xlu1 %v1143_v53 }
 0x49e   :  { %1144 = vpow2.f32 %v779_v54 }
 0x4a4   :  { %v1145_v55 = vpop.eup %1144 }
 0x4a5   :  { %783 = vadd.xlane.f32.xlu1 %v1145_v55 }
 0x510   :  { %v782_v56 = vpop.xlane.xlu1 %781 }
 0x511   :  { %1146 = vrcp.f32 %v782_v56  ;;  %v796_v61 = vand.u32 2147483648, %v782_v56  ;;  %v794_v63 = vand.u32 2147483647, %v782_v56  ;;  %vm790_vm1 = vweird.f32 %v782_v56 }
 0x513   :  { %v797_v2 = vor.u32 1.1754944e-38, %v796_v61  ;;  %vm795_vm3 = vcmp.eq.f32.partialorder %v794_v63, 8.507059e+37 }
 0x517   :  { %v1147_v57 = vpop.eup %1146 }
 0x518   :  { %v786_v58 = vmul.f32 %v1147_v57, %v782_v56  ;;  %v784_v59 = vpop.xlane.xlu1 %783  ;;  %vm791_vm0 = vweird.f32 %v1147_v57 }
 0x519   :  { %1148 = vrcp.f32 %v784_v59  ;;  %vm792_vm2 = vmor %vm790_vm1, %vm791_vm0  ;;  %v811_v8 = vand.u32 2147483648, %v784_v59  ;;  %v809_v10 = vand.u32 2147483647, %v784_v59  ;;  %vm805_vm5 = vweird.f32 %v784_v59 }
 0x51a   :  { %v787_v60 = vsub.f32 1.0, %v786_v58 }
 0x51b   :  { %v812_v12 = vor.u32 1.1754944e-38, %v811_v8  ;;  %vm810_vm7 = vcmp.eq.f32.partialorder %v809_v10, 8.507059e+37 }
 0x51c   :  { %v788_v62 = vmul.f32 %v1147_v57, %v787_v60 }
 0x51e   :  { %v789_v0 = vadd.f32 %v1147_v57, %v788_v62 }
 0x51f   :  { %v1149_v1 = vpop.eup %1148 }
 0x520   :  { %v801_v3 = vmul.f32 %v1149_v1, %v784_v59  ;;  %v793_v4 = vsel %vm792_vm2, %v1147_v57, %v789_v0  ;;  %vm806_vm4 = vweird.f32 %v1149_v1 }
 0x521   :  { %v798_v5 = vsel %vm795_vm3, %v797_v2, %v793_v4  ;;  %vm807_vm6 = vmor %vm805_vm5, %vm806_vm4 }
 0x522   :  { %v802_v6 = vsub.f32 1.0, %v801_v3  ;;  %v815_v7 = vmul.f32 %v1143_v53, %v798_v5 }
 0x524   :  { %v803_v9 = vmul.f32 %v1149_v1, %v802_v6  ;;  %817 = vst [vmem:[#allocation16] sm:$0xff] %v815_v7 }
 0x526   :  { %v804_v11 = vadd.f32 %v1149_v1, %v803_v9 }
 0x528   :  { %v808_v13 = vsel %vm807_vm6, %v1149_v1, %v804_v11 }
 0x529   :  { %v813_v14 = vsel %vm810_vm7, %v812_v12, %v808_v13 }
 0x52a   :  { %v816_v15 = vmul.f32 %v1145_v55, %v813_v14 }
 0x52c   :  { %818 = vst [vmem:[#allocation16 + $0x8] sm:$0xff] %v816_v15 }
 0x52d   :  { %831 = dma.vmem_to_hbm [thread:$0]  %s824_s14, 256, %s826_s18, [#allocation4], %s1384_s22, %s1384_s22, %s1385_s23  }
 0x52e   :  { %1376 = dma.done.wait [#allocation4], 256  }
 0x52f   :  { %1377 = vsyncadd [#allocation4], 4294967040 }
 0x530   :  { %836 = vsyncpa [#allocation3], 1 }
 0x531   :  { %837 = vsyncpa [#allocation6], 1 }
 0x532   :  { %838 = vsyncpa [#allocation9], 1 }
 0x533   :  { %839 = vsyncpa [#allocation12], 1 }
 0x534   :  { %840 = vsyncpa [#allocation15], 1 }
 0x535   :  { %841 = vsyncpa [#allocation4], 1 }

</bundles_post_ra>
